<compile_context>
chip_gen: v6e
topology: v6e:2x2x1
jax: 0.10.0
libtpu: 0.0.40
codegen_flags: <defaults>
</compile_context>

<pallas_src>
import numpy as np
import jax
import jax.numpy as jnp
from jax.experimental import pallas as pl
from jax.experimental.pallas import tpu as pltpu


# ---------------------------------------------------------------------------
# Per-generation tuning
# ---------------------------------------------------------------------------
def _chip_defaults():
    """(block_bytes, vmem_limit_bytes, input_buffer_count) per TPU generation."""
    kind = ""
    try:
        kind = (getattr(jax.devices()[0], "device_kind", "") or "").lower()
    except Exception:
        pass
    if "7" in kind:                          # v7x: 64 MiB physical VMEM, ~3.2 TB/s HBM
        return 4 << 20, 40 << 20, 3
    if "v6" in kind or "trillium" in kind:   # v6e: 128 MiB physical VMEM
        return 2 << 20, 64 << 20, 3
    return 2 << 20, 32 << 20, 2              # v5e / unknown: conservative


def _geometry(n, block_bytes):
    """Pick a lane-dense 2-D view (R, C) of the flat operands and block rows."""
    pad = 0
    for c in (512, 256, 128):
        if n % c == 0:
            C = c
            break
    else:
        # Rare fallback: numel not a multiple of 128 -> minimal zero pad.
        C = 128
        pad = (-n) % 128
    R = (n + pad) // C
    br_target = max(8, (block_bytes // (C * 4)) // 8 * 8)
    BR = min(br_target, max(8, ((R + 7) // 8) * 8))   # multiple of 8
    return C, pad, R, BR


# ---------------------------------------------------------------------------
# Kernels
# ---------------------------------------------------------------------------
def _mse_none_kernel(x_ref, y_ref, o_ref):
    d = x_ref[...].astype(jnp.float32) - y_ref[...].astype(jnp.float32)
    o_ref[...] = (d * d).astype(o_ref.dtype)


def _make_sum_kernel(BR, C, R, K, needs_mask):
    """Streaming sum of (x-y)^2 with a resident VMEM accumulator.

    Accumulates full (BR, C) tiles; ragged / clamped-duplicate tail blocks are
    masked by global row index. At the last reduction step the accumulator is
    folded down to a single (8, 128) f32 block (lane fold + sublane fold) so
    only a few KiB of partials ever hit HBM.
    """
    nfold = C // 128

    def kernel(x_ref, y_ref, o_ref, acc_ref):
        p = pl.program_id(0)
        k = pl.program_id(1)

        @pl.when(k == 0)
        def _init():
            acc_ref[...] = jnp.zeros_like(acc_ref)

        def sq():
            d = x_ref[...].astype(jnp.float32) - y_ref[...].astype(jnp.float32)
            return d * d

        if needs_mask:
            row0 = (p * K + k) * BR

            @pl.when(row0 + BR <= R)          # fully in-bounds block: no mask cost
            def _full():
                acc_ref[...] += sq()

            @pl.when(row0 + BR > R)           # ragged tail / clamped duplicate
            def _tail():
                rows = jax.lax.broadcasted_iota(jnp.int32, (BR, C), 0) + row0
                acc_ref[...] += jnp.where(rows < R, sq(), 0.0)
        else:
            acc_ref[...] += sq()

        @pl.when(k == K - 1)
        def _finalize():
            a = acc_ref[...]                  # (BR, C) f32
            af = a[:, 0:128]                  # fold lanes C -> 128
            for t in range(1, nfold):
                af = af + a[:, t * 128:(t + 1) * 128]
            # fold rows BR -> 8 and write the tiny partial block
            o_ref[...] = jnp.sum(af.reshape(BR // 8, 8, 128), axis=0)

    return kernel


# ---------------------------------------------------------------------------
# Wrapper (forward pass of torch.nn.MSELoss)
# ---------------------------------------------------------------------------
def mse_loss_pallas(input, target, reduction="mean", *, _block_bytes=None):
    if reduction not in ("none", "mean", "sum"):
        raise ValueError(f"unsupported reduction: {reduction!r}")
    assert input.shape == target.shape, (input.shape, target.shape)

    orig_shape = input.shape
    out_dtype = jnp.promote_types(input.dtype, target.dtype)
    n = int(input.size)

    if n == 0:
        if reduction == "none":
            return jnp.zeros(orig_shape, out_dtype)
        if reduction == "sum":
            return jnp.zeros((), out_dtype)
        return jnp.full((), jnp.nan, out_dtype)   # mean of empty: NaN (matches torch)

    block_bytes, vmem_limit, nbuf = _chip_defaults()
    if _block_bytes is not None:
        block_bytes = _block_bytes
    C, pad, R, BR = _geometry(n, block_bytes)

    xf = jnp.ravel(input)
    yf = jnp.ravel(target)
    if pad:
        # TODO(synk): only hit when numel % 128 != 0; costs one extra HBM pass.
        xf = jnp.pad(xf, (0, pad))
        yf = jnp.pad(yf, (0, pad))
    x2 = xf.reshape(R, C)          # free bitcast (no data movement)
    y2 = yf.reshape(R, C)

    nblocks = (R + BR - 1) // BR

    if reduction == "none":
        spec_kwargs = {}
        if nbuf > 2 and nblocks > nbuf:
            spec_kwargs["pipeline_mode"] = pl.Buffered(nbuf)
        in_spec = pl.BlockSpec((BR, C), lambda i: (i, 0), **spec_kwargs)
        out = pl.pallas_call(
            _mse_none_kernel,
            grid=(nblocks,),
            in_specs=[in_spec, in_spec],
            out_specs=pl.BlockSpec((BR, C), lambda i: (i, 0)),
            out_shape=jax.ShapeDtypeStruct((R, C), out_dtype),
            compiler_params=pltpu.CompilerParams(
                dimension_semantics=("parallel",),
                vmem_limit_bytes=vmem_limit),
        )(x2, y2)
        if pad:
            return out.reshape(-1)[:n].reshape(orig_shape)
        return out.reshape(orig_shape)          # R*C == n -> bitcast

    # ---- 'mean' / 'sum' -------------------------------------------------
    P = 2 if nblocks >= 2 else 1                # unconditional megacore split
    K = (nblocks + P - 1) // P
    needs_mask = (nblocks * BR != R) or (P * K != nblocks)

    def in_map(p, k):
        idx = p * K + k
        if P * K != nblocks:                    # clamp possible over-run block
            idx = jnp.minimum(idx, nblocks - 1)
        return (idx, 0)

    spec_kwargs = {}
    if nbuf > 2 and K > nbuf:
        spec_kwargs["pipeline_mode"] = pl.Buffered(nbuf)
    in_spec = pl.BlockSpec((BR, C), in_map, **spec_kwargs)

    kernel = _make_sum_kernel(BR, C, R, K, needs_mask)
    out = pl.pallas_call(
        kernel,
        grid=(P, K),
        in_specs=[in_spec, in_spec],
        out_specs=pl.BlockSpec((8, 128), lambda p, k: (p, 0)),
        out_shape=jax.ShapeDtypeStruct((P * 8, 128), jnp.float32),
        scratch_shapes=[pltpu.VMEM((BR, C), jnp.float32)],
        compiler_params=pltpu.CompilerParams(
            dimension_semantics=("parallel", "arbitrary"),
            vmem_limit_bytes=vmem_limit),
    )(x2, y2)

    total = jnp.sum(out, dtype=jnp.float32)     # tiny (P*8, 128) partials
    if reduction == "sum":
        return total.astype(out_dtype)
    return (total / jnp.float32(n)).astype(out_dtype)


# TODO(synk): forward-only (no custom_vjp); training would need an explicit
# backward kernel.


# ---------------------------------------------------------------------------
# Self-test
# ---------------------------------------------------------------------------
if __name__ == "__main__":
    key = jax.random.PRNGKey(0)
    k1, k2, k3, k4, k5, k6 = jax.random.split(key, 6)

    def ref_all(x, y):
        xd = np.asarray(x.astype(jnp.float32), np.float64)
        yd = np.asarray(y.astype(jnp.float32), np.float64)
        d2 = (xd - yd) ** 2
        return d2, float(d2.sum()), float(d2.mean())

    # 1) main case: (2, 4, 16, 16) f32 — numel multiple of 512 (no padding at all)
    shape = (2, 4, 16, 16)
    x = jax.random.normal(k1, shape, jnp.float32)
    y = jax.random.normal(k2, shape, jnp.float32)
    d2, s, m = ref_all(x, y)
    out_none = jax.block_until_ready(mse_loss_pallas(x, y, "none"))
    out_sum = jax.block_until_ready(mse_loss_pallas(x, y, "sum"))
    out_mean = jax.block_until_ready(mse_loss_pallas(x, y, "mean"))
    assert out_none.shape == shape
    assert np.allclose(np.asarray(out_none), d2, rtol=1e-5, atol=1e-5)
    assert np.allclose(float(out_sum), s, rtol=1e-5, atol=1e-4), (float(out_sum), s)
    assert np.allclose(float(out_mean), m, rtol=1e-5, atol=1e-6), (float(out_mean), m)

    # 2) ragged rows + even block count -> P=2 split, masked tail block
    xa = jax.random.normal(k3, (40, 128), jnp.float32)
    ya = jax.random.normal(k4, (40, 128), jnp.float32)
    _, _, ma = ref_all(xa, ya)
    got = float(jax.block_until_ready(
        mse_loss_pallas(xa, ya, "mean", _block_bytes=8 * 512 * 4)))
    assert np.allclose(got, ma, rtol=1e-5, atol=1e-6), (got, ma)

    # 3) odd block count -> clamped duplicate block must be fully masked
    xb = jax.random.normal(k5, (12288,), jnp.float32)
    yb = jax.random.normal(k6, (12288,), jnp.float32)
    _, sb, _ = ref_all(xb, yb)
    got = float(jax.block_until_ready(
        mse_loss_pallas(xb, yb, "sum", _block_bytes=8 * 512 * 4)))
    assert np.allclose(got, sb, rtol=1e-5, atol=1e-3), (got, sb)

    # 4) numel not a multiple of 128 -> minimal-pad fallback path
    xc = jax.random.normal(k1, (3, 5), jnp.float32)
    yc = jax.random.normal(k2, (3, 5), jnp.float32)
    d2c, _, mc = ref_all(xc, yc)
    nc = jax.block_until_ready(mse_loss_pallas(xc, yc, "none"))
    mcg = float(jax.block_until_ready(mse_loss_pallas(xc, yc, "mean")))
    assert nc.shape == (3, 5)
    assert np.allclose(np.asarray(nc), d2c, rtol=1e-5, atol=1e-6)
    assert np.allclose(mcg, mc, rtol=1e-5, atol=1e-6), (mcg, mc)

    # 5) bf16 inputs (f32 accumulation, bf16 result)
    xd_ = jax.random.normal(k3, shape, jnp.float32).astype(jnp.bfloat16)
    yd_ = jax.random.normal(k4, shape, jnp.float32).astype(jnp.bfloat16)
    _, _, md = ref_all(xd_, yd_)
    got = float(jax.block_until_ready(mse_loss_pallas(xd_, yd_, "mean")))
    assert np.allclose(got, md, rtol=1e-2, atol=1e-3), (got, md)

    print("KERNEL_OK")
</pallas_src>

<mosaic_0001>
module attributes {stable_mosaic.version = 11 : i64} {
  func.func @_mse_none_kernel(%arg0: i32, %arg1: memref<8x512xf32, #tpu.memory_space<vmem>>, %arg2: memref<8x512xf32, #tpu.memory_space<vmem>>, %arg3: memref<8x512xf32, #tpu.memory_space<vmem>>) attributes {dimension_semantics = [#tpu.dimension_semantics<parallel>], iteration_bounds = array<i64: 1>, scalar_prefetch = 0 : i64, scratch_operands = 0 : i64, tpu.core_type = #tpu.core_type<tc>, window_params = [{transform_indices = @transform_0, window_bounds = array<i64: 8, 512>}, {transform_indices = @transform_1, window_bounds = array<i64: 8, 512>}, {transform_indices = @transform_2, window_bounds = array<i64: 8, 512>}]} {
    %c0 = arith.constant 0 : index
    %c0_0 = arith.constant 0 : index
    %0 = vector.load %arg1[%c0, %c0_0] : memref<8x512xf32, #tpu.memory_space<vmem>>, vector<8x512xf32>
    %c0_1 = arith.constant 0 : index
    %c0_2 = arith.constant 0 : index
    %1 = vector.load %arg2[%c0_1, %c0_2] : memref<8x512xf32, #tpu.memory_space<vmem>>, vector<8x512xf32>
    %2 = arith.subf %0, %1 : vector<8x512xf32>
    %3 = arith.mulf %2, %2 : vector<8x512xf32>
    %c0_3 = arith.constant 0 : index
    %c0_4 = arith.constant 0 : index
    %4 = vector.load %arg3[%c0_3, %c0_4] : memref<8x512xf32, #tpu.memory_space<vmem>>, vector<8x512xf32>
    tpu.vector_store %arg3[%c0_3, %c0_4], %3 {strides = array<i32>} : memref<8x512xf32, #tpu.memory_space<vmem>>, vector<8x512xf32>,
    return
  }
  func.func @transform_0(%arg0: i32) -> (i32, i32) {
    %c0_i32 = arith.constant 0 : i32
    %c0_i32_0 = arith.constant 0 : i32
    return %arg0, %c0_i32 : i32, i32
  }
  func.func @transform_1(%arg0: i32) -> (i32, i32) {
    %c0_i32 = arith.constant 0 : i32
    %c0_i32_0 = arith.constant 0 : i32
    return %arg0, %c0_i32 : i32, i32
  }
  func.func @transform_2(%arg0: i32) -> (i32, i32) {
    %c0_i32 = arith.constant 0 : i32
    %c0_i32_0 = arith.constant 0 : i32
    return %arg0, %c0_i32 : i32, i32
  }
}

</mosaic_0001>

<bundles_post_ra>
// kernel: tpu_custom_call.1
= control target key start
LH: loop header
LB: loop body
LE: loop exit
PB: predicated region body
PF: predicated region fallthrough
CT: control target
= control target key end

     0   :  { %7 = vsyncpa [#allocation3], 0  ;;  %s187_s0 = inlined_call_operand.hbm [shape: f32[4,512], index: 0, kind: input, shape index: {}]   ;;  %s188_s1 = inlined_call_operand.hbm [shape: f32[4,512], index: 1, kind: input, shape index: {}]   ;;  %s189_s2 = inlined_call_operand.hbm [shape: f32[4,512], index: 2, kind: output, shape index: {}]  }
   0x1   :  { %8 = vsyncpa [#allocation6], 0 }
   0x2   :  { %9 = vsyncpa [#allocation4], 0 }
   0x3   :  { %14 = vsyncadd [#allocation3], 256  ;;  %s149_s9 = smov [#allocation2]  }
   0x4   :  { %s15_s10 = sshll.u32 %s149_s9, 4  ;;  %s16_s10 = int_to_ptr.vmem [resolvable:$true] %s15_s10 }
   0x5   :  { %s91_s11 = scalar_lea.vmem %s16_s10, 256  ;;  %s95_s12 = scalar_lea.vmem %s16_s10, 512 }
   0x6   :  { %p92_p0 = scmp.ne.s32.totalorder %s16_s10, %s91_s11  ;;  %p96_p1 = scmp.lt.s32.totalorder %s16_s10, %s16_s10 }
   0x7   :  { %p97_p2 = scmp.lt.s32.totalorder %s95_s12, %s91_s11 }
   0x9   :  { %p98_p3 = por %p97_p2, %p96_p1 }
   0xb   :  { %p99_p4 = pnand %p98_p3, %p92_p0 }
   0xd   :  { %102 = shalt.err (!%p99_p4)
}
   0xe   :  { %s150_s13 = smov 256   ;;  %s151_s14 = smov 16  }
   0xf   :  { %21 = dma.hbm_to_vmem [thread:$0]  %s187_s0, 256, %s16_s10, [#allocation3], %s150_s13, %s150_s13, %s151_s14  }
  0x10   :  { %26 = vsyncadd [#allocation6], 256  ;;  %s152_s17 = smov [#allocation5]  }
  0x11   :  { %s27_s18 = sshll.u32 %s152_s17, 4  ;;  %s28_s18 = int_to_ptr.vmem [resolvable:$true] %s27_s18 }
  0x12   :  { %s111_s19 = scalar_lea.vmem %s28_s18, 256  ;;  %s115_s20 = scalar_lea.vmem %s28_s18, 512 }
  0x13   :  { %p112_p5 = scmp.ne.s32.totalorder %s28_s18, %s111_s19  ;;  %p116_p6 = scmp.lt.s32.totalorder %s28_s18, %s28_s18 }
  0x14   :  { %p117_p7 = scmp.lt.s32.totalorder %s115_s20, %s111_s19 }
  0x16   :  { %p118_p8 = por %p117_p7, %p116_p6 }
  0x18   :  { %p119_p9 = pnand %p118_p8, %p112_p5 }
  0x1a   :  { %122 = shalt.err (!%p119_p9)
}
  0x1b   :  { %33 = dma.hbm_to_vmem [thread:$0]  %s188_s1, 256, %s28_s18, [#allocation6], %s150_s13, %s150_s13, %s151_s14  }
  0x1c   :  { %143 = dma.done.wait [#allocation3], 512  }
  0x1d   :  { %144 = vsyncadd [#allocation3], 4294966784 }
  0x1e   :  { %145 = dma.done.wait [#allocation6], 512  }
  0x1f   :  { %146 = vsyncadd [#allocation6], 4294966784  ;;  %v40_v0 = vld [vmem:[#allocation2] sm:$0xff]  ;;  %v41_v2 = vld [vmem:[#allocation2 + $0x8] sm:$0xff] }
  0x20   :  { %v44_v1 = vld [vmem:[#allocation5] sm:$0xff]  ;;  %v45_v4 = vld [vmem:[#allocation5 + $0x8] sm:$0xff]  ;;  %v42_v5 = vld [vmem:[#allocation2 + $0x10] sm:$0xff] }
  0x21   :  { %v48_v3 = vsub.f32 %v40_v0, %v44_v1  ;;  %v46_v6 = vld [vmem:[#allocation5 + $0x10] sm:$0xff]  ;;  %v49_v7 = vsub.f32 %v41_v2, %v45_v4  ;;  %v43_v9 = vld [vmem:[#allocation2 + $0x18] sm:$0xff] }
  0x22   :  { %v50_v8 = vsub.f32 %v42_v5, %v46_v6  ;;  %v47_v10 = vld [vmem:[#allocation5 + $0x18] sm:$0xff] }
  0x23   :  { %v52_v11 = vmul.f32 %v48_v3, %v48_v3  ;;  %v51_v12 = vsub.f32 %v43_v9, %v47_v10  ;;  %v53_v13 = vmul.f32 %v49_v7, %v49_v7 }
  0x24   :  { %v54_v14 = vmul.f32 %v50_v8, %v50_v8 }
  0x25   :  { %56 = vst [vmem:[#allocation7] sm:$0xff] %v52_v11  ;;  %v55_v15 = vmul.f32 %v51_v12, %v51_v12  ;;  %57 = vst [vmem:[#allocation7 + $0x8] sm:$0xff] %v53_v13 }
  0x26   :  { %58 = vst [vmem:[#allocation7 + $0x10] sm:$0xff] %v54_v14 }
  0x27   :  { %59 = vst [vmem:[#allocation7 + $0x18] sm:$0xff] %v55_v15 }
  0x28   :  { %64 = vsyncadd [#allocation4], 256  ;;  %s153_s0 = smov [#allocation7]  }
  0x29   :  { %s65_s1 = sshll.u32 %s153_s0, 4  ;;  %s66_s1 = int_to_ptr.vmem [resolvable:$true] %s65_s1 }
  0x2a   :  { %s123_s23 = scalar_lea.vmem %s66_s1, 256  ;;  %s127_s24 = scalar_lea.vmem %s66_s1, 512 }
  0x2b   :  { %p124_p10 = scmp.ne.s32.totalorder %s66_s1, %s123_s23  ;;  %p128_p11 = scmp.lt.s32.totalorder %s66_s1, %s66_s1 }
  0x2c   :  { %p129_p12 = scmp.lt.s32.totalorder %s127_s24, %s123_s23 }
  0x2e   :  { %p130_p13 = por %p129_p12, %p128_p11 }
  0x30   :  { %p131_p0 = pnand %p130_p13, %p124_p10 }
  0x32   :  { %134 = shalt.err (!%p131_p0)
}
  0x33   :  { %71 = dma.vmem_to_hbm [thread:$0]  %s66_s1, 256, %s189_s2, [#allocation4], %s150_s13, %s150_s13, %s151_s14  }
  0x34   :  { %147 = dma.done.wait [#allocation4], 512  }
  0x35   :  { %148 = vsyncadd [#allocation4], 4294966784 }
  0x36   :  { %75 = vsyncpa [#allocation3], 1 }
  0x37   :  { %76 = vsyncpa [#allocation6], 1 }
  0x38   :  { %77 = vsyncpa [#allocation4], 1 }

</bundles_post_ra>
